<compile_context>
chip_gen: v6e
topology: v6e:2x2x1
jax: 0.10.0
libtpu: 0.0.40
codegen_flags: <defaults>
</compile_context>

<pallas_src>
import functools

import jax
import jax.numpy as jnp
from jax.experimental import pallas as pl
from jax.experimental.pallas import tpu as pltpu


def _residual_cblock_kernel(x_ref, w1_ref, b1_ref, w2_ref, b2_ref, wres_ref,
                            mask_ref, out_ref, *, H, W):
    """One image per grid step; everything channel-first and lane-dense.

    x_ref:    (1, Cin,  P)     P = H*W, flattened spatial on the lane axis
    w1_ref:   (9, Cmid, Cin)   conv1 tap weights, tap index t = ky*3 + kx
    b1_ref:   (Cmid, 1)
    w2_ref:   (9, Cout, Cmid)  conv2 tap weights
    b2_ref:   (Cout, 1)
    wres_ref: (Cout, Cin)      1x1 residual conv weight (bias=False)
    mask_ref: (9, 1, P)        0/1 boundary masks (this is the zero padding)
    out_ref:  (1, Cout, P)
    """
    P = H * W
    x = x_ref[0]                                            # (Cin, P)

    def shifted(src, ky, kx):
        # src[c, p] -> src[c, p + dy*W + dx] for in-bounds taps, 0 otherwise.
        # Roll wrap-around lanes are exactly the out-of-bounds taps -> masked.
        dy, dx = ky - 1, kx - 1
        d = dy * W + dx
        if d == 0:
            return src
        rolled = pltpu.roll(src, shift=(-d) % P, axis=1)    # XLU, nearly free
        return rolled * mask_ref[ky * 3 + kx]               # (1, P) broadcast

    def conv3x3(src, w_ref):
        # sum_t  w_ref[t] @ shifted_t(src) : (Co, Ci) @ (Ci, P) -> (Co, P)
        acc = None
        for ky in range(3):
            for kx in range(3):
                tap = jnp.dot(w_ref[ky * 3 + kx], shifted(src, ky, kx),
                              preferred_element_type=jnp.float32)
                acc = tap if acc is None else acc + tap
        return acc

    # conv1 + ReLU; h stays a VMEM value, never touches HBM.
    h = jnp.maximum(conv3x3(x, w1_ref) + b1_ref[...], 0.0)  # (Cmid, P)

    # Accumulator initialized with residual 1x1 conv + conv2 bias (hoisted),
    # conv2 taps accumulate on top; final ReLU; lane-dense full-width store.
    acc = jnp.dot(wres_ref[...], x, preferred_element_type=jnp.float32)
    acc = acc + b2_ref[...]
    acc = acc + conv3x3(h, w2_ref)
    out_ref[0] = jnp.maximum(acc, 0.0).astype(out_ref.dtype)


def _tap_masks(H, W):
    """(9, 1, H*W) 0/1 masks: mask[t, 0, y*W+x] == 1 iff (y+dy, x+dx) in-bounds."""
    y = jnp.arange(H, dtype=jnp.int32).reshape(H, 1)
    x = jnp.arange(W, dtype=jnp.int32).reshape(1, W)
    masks = []
    for ky in range(3):
        for kx in range(3):
            dy, dx = ky - 1, kx - 1
            ok = (y + dy >= 0) & (y + dy < H) & (x + dx >= 0) & (x + dx < W)
            masks.append(ok.reshape(1, H * W))
    return jnp.stack(masks, axis=0).astype(jnp.float32)


def residual_cblock(x_nchw, w1_oihw, b1, w2_oihw, b2, wres_oi):
    """ResidualCBlock forward. x_nchw: (N, Cin, H, W) f32 -> (N, Cout, H, W)."""
    N, Cin, H, W = x_nchw.shape
    Cmid = w1_oihw.shape[0]
    Cout = w2_oihw.shape[0]
    P = H * W

    # Layout-only prep: activation reshape is pure metadata (no transpose, no
    # extra HBM pass); weight transposes are tiny one-time ops.
    x = x_nchw.reshape(N, Cin, P)
    w1 = jnp.transpose(w1_oihw, (2, 3, 0, 1)).reshape(9, Cmid, Cin)   # tap-major
    w2 = jnp.transpose(w2_oihw, (2, 3, 0, 1)).reshape(9, Cout, Cmid)
    masks = _tap_masks(H, W)

    # VMEM budget derived from actual block / weight / live-temp sizes.
    itm = 4  # f32 bytes
    blk_bytes = itm * P * (Cin + Cout)                      # in + out blocks
    w_bytes = itm * (9 * Cmid * Cin + Cmid + 9 * Cout * Cmid + Cout
                     + Cout * Cin + 9 * P)
    body_bytes = itm * P * (4 * max(Cin, Cmid, Cout) + Cmid + 2 * Cout)
    vmem_limit = max(2 * (blk_bytes + w_bytes) + body_bytes + (2 << 20), 4 << 20)

    kernel = functools.partial(_residual_cblock_kernel, H=H, W=W)
    out_flat = pl.pallas_call(
        kernel,
        out_shape=jax.ShapeDtypeStruct((N, Cout, P), x.dtype),
        grid_spec=pltpu.PrefetchScalarGridSpec(
            num_scalar_prefetch=0,
            grid=(N,),               # batch axis; N>=2 -> v7x megacore shards it
            in_specs=[
                pl.BlockSpec((1, Cin, P), lambda n: (n, 0, 0)),
                pl.BlockSpec((9, Cmid, Cin), lambda n: (0, 0, 0)),
                pl.BlockSpec((Cmid, 1), lambda n: (0, 0)),
                pl.BlockSpec((9, Cout, Cmid), lambda n: (0, 0, 0)),
                pl.BlockSpec((Cout, 1), lambda n: (0, 0)),
                pl.BlockSpec((Cout, Cin), lambda n: (0, 0)),
                pl.BlockSpec((9, 1, P), lambda n: (0, 0, 0)),
            ],
            out_specs=pl.BlockSpec((1, Cout, P), lambda n: (n, 0, 0)),
        ),
        compiler_params=pltpu.CompilerParams(
            dimension_semantics=("parallel",),
            vmem_limit_bytes=int(vmem_limit),
        ),
    )(x, w1, b1.reshape(Cmid, 1), w2, b2.reshape(Cout, 1), wres_oi, masks)

    # (N, Cout, H*W) -> (N, Cout, H, W): pure metadata reshape.
    return out_flat.reshape(N, Cout, H, W)


def _ref_forward(x, w1, b1, w2, b2, wres):
    """Pure-JAX reference (lax.conv), NCHW / OIHW — mirrors the PyTorch module."""
    dn = ("NCHW", "OIHW", "NCHW")
    h = jax.lax.conv_general_dilated(x, w1, (1, 1), ((1, 1), (1, 1)),
                                     dimension_numbers=dn)
    h = jnp.maximum(h + b1[None, :, None, None], 0.0)
    y = jax.lax.conv_general_dilated(h, w2, (1, 1), ((1, 1), (1, 1)),
                                     dimension_numbers=dn)
    y = y + b2[None, :, None, None]
    r = jax.lax.conv_general_dilated(x, wres[:, :, None, None], (1, 1),
                                     ((0, 0), (0, 0)), dimension_numbers=dn)
    return jnp.maximum(y + r, 0.0)


if __name__ == "__main__":
    # features = (4, 8, 8): Cin != Cout, so the 1x1 resConv path is exercised.
    N, Cin, Cmid, Cout, H, W = 2, 4, 8, 8, 16, 16
    key = jax.random.PRNGKey(0)
    k = jax.random.split(key, 6)
    x = jax.random.normal(k[0], (N, Cin, H, W), jnp.float32)
    w1 = jax.random.normal(k[1], (Cmid, Cin, 3, 3), jnp.float32) * 0.2   # Conv2d weight (O,I,kH,kW)
    b1 = jax.random.normal(k[2], (Cmid,), jnp.float32) * 0.1
    w2 = jax.random.normal(k[3], (Cout, Cmid, 3, 3), jnp.float32) * 0.2
    b2 = jax.random.normal(k[4], (Cout,), jnp.float32) * 0.1
    wres = jax.random.normal(k[5], (Cout, Cin), jnp.float32) * 0.2       # 1x1 conv weight (O,I)

    out = jax.block_until_ready(residual_cblock(x, w1, b1, w2, b2, wres))
    ref = _ref_forward(x, w1, b1, w2, b2, wres)

    assert out.shape == (N, Cout, H, W), out.shape
    err = float(jnp.max(jnp.abs(out - ref)))
    assert jnp.allclose(out, ref, rtol=1e-4, atol=1e-4), f"max abs err {err}"
    print("KERNEL_OK")
</pallas_src>

<mosaic_0001>
module attributes {stable_mosaic.version = 11 : i64} {
  func.func @_residual_cblock_kernel(%arg0: i32, %arg1: memref<1x4x256xf32, #tpu.memory_space<vmem>>, %arg2: memref<9x8x4xf32, #tpu.memory_space<vmem>>, %arg3: memref<8x1xf32, #tpu.memory_space<vmem>>, %arg4: memref<9x8x8xf32, #tpu.memory_space<vmem>>, %arg5: memref<8x1xf32, #tpu.memory_space<vmem>>, %arg6: memref<8x4xf32, #tpu.memory_space<vmem>>, %arg7: memref<9x1x256xf32, #tpu.memory_space<vmem>>, %arg8: memref<1x8x256xf32, #tpu.memory_space<vmem>>) attributes {dimension_semantics = [#tpu.dimension_semantics<parallel>], iteration_bounds = array<i64: 2>, scalar_prefetch = 0 : i64, scratch_operands = 0 : i64, tpu.core_type = #tpu.core_type<tc>, window_params = [{transform_indices = @transform_0, window_bounds = array<i64: 1, 4, 256>}, {pipeline_mode = #tpu.pipeline_mode<synchronous>, transform_indices = @transform_1, window_bounds = array<i64: 9, 8, 4>}, {pipeline_mode = #tpu.pipeline_mode<synchronous>, transform_indices = @transform_2, window_bounds = array<i64: 8, 1>}, {pipeline_mode = #tpu.pipeline_mode<synchronous>, transform_indices = @transform_3, window_bounds = array<i64: 9, 8, 8>}, {pipeline_mode = #tpu.pipeline_mode<synchronous>, transform_indices = @transform_4, window_bounds = array<i64: 8, 1>}, {pipeline_mode = #tpu.pipeline_mode<synchronous>, transform_indices = @transform_5, window_bounds = array<i64: 8, 4>}, {pipeline_mode = #tpu.pipeline_mode<synchronous>, transform_indices = @transform_6, window_bounds = array<i64: 9, 1, 256>}, {transform_indices = @transform_7, window_bounds = array<i64: 1, 8, 256>}]} {
    %c0 = arith.constant 0 : index
    %c0_0 = arith.constant 0 : index
    %c0_1 = arith.constant 0 : index
    %0 = vector.load %arg1[%c0, %c0_0, %c0_1] : memref<1x4x256xf32, #tpu.memory_space<vmem>>, vector<1x4x256xf32>
    %1 = vector.shape_cast %0 : vector<1x4x256xf32> to vector<4x256xf32>
    %c0_2 = arith.constant 0 : index
    %c0_3 = arith.constant 0 : index
    %c0_4 = arith.constant 0 : index
    %2 = vector.load %arg2[%c0_2, %c0_3, %c0_4] : memref<9x8x4xf32, #tpu.memory_space<vmem>>, vector<1x8x4xf32>
    %3 = vector.shape_cast %2 : vector<1x8x4xf32> to vector<8x4xf32>
    %c17_i32 = arith.constant 17 : i32
    %4 = tpu.dynamic_rotate %1 by %c17_i32 dim 1 : vector<4x256xf32>, i32 -> vector<4x256xf32>
    %c0_5 = arith.constant 0 : index
    %c0_6 = arith.constant 0 : index
    %c0_7 = arith.constant 0 : index
    %5 = vector.load %arg7[%c0_5, %c0_6, %c0_7] : memref<9x1x256xf32, #tpu.memory_space<vmem>>, vector<1x1x256xf32>
    %6 = vector.shape_cast %5 : vector<1x1x256xf32> to vector<1x256xf32>
    %7 = vector.broadcast %6 : vector<1x256xf32> to vector<4x256xf32>
    %8 = arith.mulf %4, %7 : vector<4x256xf32>
    %cst = arith.constant dense<0.000000e+00> : vector<8x256xf32>
    %9 = tpu.matmul %3, %8, %cst {dimension_numbers = #tpu.dot_dimension_numbers<[1], [0], [0], [1], [0, 0, 1, 1], [], []>} : vector<8x4xf32>, vector<4x256xf32>, vector<8x256xf32> -> vector<8x256xf32>
    %c1 = arith.constant 1 : index
    %c0_8 = arith.constant 0 : index
    %c0_9 = arith.constant 0 : index
    %10 = vector.load %arg2[%c1, %c0_8, %c0_9] : memref<9x8x4xf32, #tpu.memory_space<vmem>>, vector<1x8x4xf32>
    %11 = vector.shape_cast %10 : vector<1x8x4xf32> to vector<8x4xf32>
    %c16_i32 = arith.constant 16 : i32
    %12 = tpu.dynamic_rotate %1 by %c16_i32 dim 1 : vector<4x256xf32>, i32 -> vector<4x256xf32>
    %c1_10 = arith.constant 1 : index
    %c0_11 = arith.constant 0 : index
    %c0_12 = arith.constant 0 : index
    %13 = vector.load %arg7[%c1_10, %c0_11, %c0_12] : memref<9x1x256xf32, #tpu.memory_space<vmem>>, vector<1x1x256xf32>
    %14 = vector.shape_cast %13 : vector<1x1x256xf32> to vector<1x256xf32>
    %15 = vector.broadcast %14 : vector<1x256xf32> to vector<4x256xf32>
    %16 = arith.mulf %12, %15 : vector<4x256xf32>
    %cst_13 = arith.constant dense<0.000000e+00> : vector<8x256xf32>
    %17 = tpu.matmul %11, %16, %cst_13 {dimension_numbers = #tpu.dot_dimension_numbers<[1], [0], [0], [1], [0, 0, 1, 1], [], []>} : vector<8x4xf32>, vector<4x256xf32>, vector<8x256xf32> -> vector<8x256xf32>
    %18 = arith.addf %9, %17 : vector<8x256xf32>
    %c2 = arith.constant 2 : index
    %c0_14 = arith.constant 0 : index
    %c0_15 = arith.constant 0 : index
    %19 = vector.load %arg2[%c2, %c0_14, %c0_15] : memref<9x8x4xf32, #tpu.memory_space<vmem>>, vector<1x8x4xf32>
    %20 = vector.shape_cast %19 : vector<1x8x4xf32> to vector<8x4xf32>
    %c15_i32 = arith.constant 15 : i32
    %21 = tpu.dynamic_rotate %1 by %c15_i32 dim 1 : vector<4x256xf32>, i32 -> vector<4x256xf32>
    %c2_16 = arith.constant 2 : index
    %c0_17 = arith.constant 0 : index
    %c0_18 = arith.constant 0 : index
    %22 = vector.load %arg7[%c2_16, %c0_17, %c0_18] : memref<9x1x256xf32, #tpu.memory_space<vmem>>, vector<1x1x256xf32>
    %23 = vector.shape_cast %22 : vector<1x1x256xf32> to vector<1x256xf32>
    %24 = vector.broadcast %23 : vector<1x256xf32> to vector<4x256xf32>
    %25 = arith.mulf %21, %24 : vector<4x256xf32>
    %cst_19 = arith.constant dense<0.000000e+00> : vector<8x256xf32>
    %26 = tpu.matmul %20, %25, %cst_19 {dimension_numbers = #tpu.dot_dimension_numbers<[1], [0], [0], [1], [0, 0, 1, 1], [], []>} : vector<8x4xf32>, vector<4x256xf32>, vector<8x256xf32> -> vector<8x256xf32>
    %27 = arith.addf %18, %26 : vector<8x256xf32>
    %c3 = arith.constant 3 : index
    %c0_20 = arith.constant 0 : index
    %c0_21 = arith.constant 0 : index
    %28 = vector.load %arg2[%c3, %c0_20, %c0_21] : memref<9x8x4xf32, #tpu.memory_space<vmem>>, vector<1x8x4xf32>
    %29 = vector.shape_cast %28 : vector<1x8x4xf32> to vector<8x4xf32>
    %c1_i32 = arith.constant 1 : i32
    %30 = tpu.dynamic_rotate %1 by %c1_i32 dim 1 : vector<4x256xf32>, i32 -> vector<4x256xf32>
    %c3_22 = arith.constant 3 : index
    %c0_23 = arith.constant 0 : index
    %c0_24 = arith.constant 0 : index
    %31 = vector.load %arg7[%c3_22, %c0_23, %c0_24] : memref<9x1x256xf32, #tpu.memory_space<vmem>>, vector<1x1x256xf32>
    %32 = vector.shape_cast %31 : vector<1x1x256xf32> to vector<1x256xf32>
    %33 = vector.broadcast %32 : vector<1x256xf32> to vector<4x256xf32>
    %34 = arith.mulf %30, %33 : vector<4x256xf32>
    %cst_25 = arith.constant dense<0.000000e+00> : vector<8x256xf32>
    %35 = tpu.matmul %29, %34, %cst_25 {dimension_numbers = #tpu.dot_dimension_numbers<[1], [0], [0], [1], [0, 0, 1, 1], [], []>} : vector<8x4xf32>, vector<4x256xf32>, vector<8x256xf32> -> vector<8x256xf32>
    %36 = arith.addf %27, %35 : vector<8x256xf32>
    %c4 = arith.constant 4 : index
    %c0_26 = arith.constant 0 : index
    %c0_27 = arith.constant 0 : index
    %37 = vector.load %arg2[%c4, %c0_26, %c0_27] : memref<9x8x4xf32, #tpu.memory_space<vmem>>, vector<1x8x4xf32>
    %38 = vector.shape_cast %37 : vector<1x8x4xf32> to vector<8x4xf32>
    %cst_28 = arith.constant dense<0.000000e+00> : vector<8x256xf32>
    %39 = tpu.matmul %38, %1, %cst_28 {dimension_numbers = #tpu.dot_dimension_numbers<[1], [0], [0], [1], [0, 0, 1, 1], [], []>} : vector<8x4xf32>, vector<4x256xf32>, vector<8x256xf32> -> vector<8x256xf32>
    %40 = arith.addf %36, %39 : vector<8x256xf32>
    %c5 = arith.constant 5 : index
    %c0_29 = arith.constant 0 : index
    %c0_30 = arith.constant 0 : index
    %41 = vector.load %arg2[%c5, %c0_29, %c0_30] : memref<9x8x4xf32, #tpu.memory_space<vmem>>, vector<1x8x4xf32>
    %42 = vector.shape_cast %41 : vector<1x8x4xf32> to vector<8x4xf32>
    %c255_i32 = arith.constant 255 : i32
    %43 = tpu.dynamic_rotate %1 by %c255_i32 dim 1 : vector<4x256xf32>, i32 -> vector<4x256xf32>
    %c5_31 = arith.constant 5 : index
    %c0_32 = arith.constant 0 : index
    %c0_33 = arith.constant 0 : index
    %44 = vector.load %arg7[%c5_31, %c0_32, %c0_33] : memref<9x1x256xf32, #tpu.memory_space<vmem>>, vector<1x1x256xf32>
    %45 = vector.shape_cast %44 : vector<1x1x256xf32> to vector<1x256xf32>
    %46 = vector.broadcast %45 : vector<1x256xf32> to vector<4x256xf32>
    %47 = arith.mulf %43, %46 : vector<4x256xf32>
    %cst_34 = arith.constant dense<0.000000e+00> : vector<8x256xf32>
    %48 = tpu.matmul %42, %47, %cst_34 {dimension_numbers = #tpu.dot_dimension_numbers<[1], [0], [0], [1], [0, 0, 1, 1], [], []>} : vector<8x4xf32>, vector<4x256xf32>, vector<8x256xf32> -> vector<8x256xf32>
    %49 = arith.addf %40, %48 : vector<8x256xf32>
    %c6 = arith.constant 6 : index
    %c0_35 = arith.constant 0 : index
    %c0_36 = arith.constant 0 : index
    %50 = vector.load %arg2[%c6, %c0_35, %c0_36] : memref<9x8x4xf32, #tpu.memory_space<vmem>>, vector<1x8x4xf32>
    %51 = vector.shape_cast %50 : vector<1x8x4xf32> to vector<8x4xf32>
    %c241_i32 = arith.constant 241 : i32
    %52 = tpu.dynamic_rotate %1 by %c241_i32 dim 1 : vector<4x256xf32>, i32 -> vector<4x256xf32>
    %c6_37 = arith.constant 6 : index
    %c0_38 = arith.constant 0 : index
    %c0_39 = arith.constant 0 : index
    %53 = vector.load %arg7[%c6_37, %c0_38, %c0_39] : memref<9x1x256xf32, #tpu.memory_space<vmem>>, vector<1x1x256xf32>
    %54 = vector.shape_cast %53 : vector<1x1x256xf32> to vector<1x256xf32>
    %55 = vector.broadcast %54 : vector<1x256xf32> to vector<4x256xf32>
    %56 = arith.mulf %52, %55 : vector<4x256xf32>
    %cst_40 = arith.constant dense<0.000000e+00> : vector<8x256xf32>
    %57 = tpu.matmul %51, %56, %cst_40 {dimension_numbers = #tpu.dot_dimension_numbers<[1], [0], [0], [1], [0, 0, 1, 1], [], []>} : vector<8x4xf32>, vector<4x256xf32>, vector<8x256xf32> -> vector<8x256xf32>
    %58 = arith.addf %49, %57 : vector<8x256xf32>
    %c7 = arith.constant 7 : index
    %c0_41 = arith.constant 0 : index
    %c0_42 = arith.constant 0 : index
    %59 = vector.load %arg2[%c7, %c0_41, %c0_42] : memref<9x8x4xf32, #tpu.memory_space<vmem>>, vector<1x8x4xf32>
    %60 = vector.shape_cast %59 : vector<1x8x4xf32> to vector<8x4xf32>
    %c240_i32 = arith.constant 240 : i32
    %61 = tpu.dynamic_rotate %1 by %c240_i32 dim 1 : vector<4x256xf32>, i32 -> vector<4x256xf32>
    %c7_43 = arith.constant 7 : index
    %c0_44 = arith.constant 0 : index
    %c0_45 = arith.constant 0 : index
    %62 = vector.load %arg7[%c7_43, %c0_44, %c0_45] : memref<9x1x256xf32, #tpu.memory_space<vmem>>, vector<1x1x256xf32>
    %63 = vector.shape_cast %62 : vector<1x1x256xf32> to vector<1x256xf32>
    %64 = vector.broadcast %63 : vector<1x256xf32> to vector<4x256xf32>
    %65 = arith.mulf %61, %64 : vector<4x256xf32>
    %cst_46 = arith.constant dense<0.000000e+00> : vector<8x256xf32>
    %66 = tpu.matmul %60, %65, %cst_46 {dimension_numbers = #tpu.dot_dimension_numbers<[1], [0], [0], [1], [0, 0, 1, 1], [], []>} : vector<8x4xf32>, vector<4x256xf32>, vector<8x256xf32> -> vector<8x256xf32>
    %67 = arith.addf %58, %66 : vector<8x256xf32>
    %c8 = arith.constant 8 : index
    %c0_47 = arith.constant 0 : index
    %c0_48 = arith.constant 0 : index
    %68 = vector.load %arg2[%c8, %c0_47, %c0_48] : memref<9x8x4xf32, #tpu.memory_space<vmem>>, vector<1x8x4xf32>
    %69 = vector.shape_cast %68 : vector<1x8x4xf32> to vector<8x4xf32>
    %c239_i32 = arith.constant 239 : i32
    %70 = tpu.dynamic_rotate %1 by %c239_i32 dim 1 : vector<4x256xf32>, i32 -> vector<4x256xf32>
    %c8_49 = arith.constant 8 : index
    %c0_50 = arith.constant 0 : index
    %c0_51 = arith.constant 0 : index
    %71 = vector.load %arg7[%c8_49, %c0_50, %c0_51] : memref<9x1x256xf32, #tpu.memory_space<vmem>>, vector<1x1x256xf32>
    %72 = vector.shape_cast %71 : vector<1x1x256xf32> to vector<1x256xf32>
    %73 = vector.broadcast %72 : vector<1x256xf32> to vector<4x256xf32>
    %74 = arith.mulf %70, %73 : vector<4x256xf32>
    %cst_52 = arith.constant dense<0.000000e+00> : vector<8x256xf32>
    %75 = tpu.matmul %69, %74, %cst_52 {dimension_numbers = #tpu.dot_dimension_numbers<[1], [0], [0], [1], [0, 0, 1, 1], [], []>} : vector<8x4xf32>, vector<4x256xf32>, vector<8x256xf32> -> vector<8x256xf32>
    %76 = arith.addf %67, %75 : vector<8x256xf32>
    %c0_53 = arith.constant 0 : index
    %c0_54 = arith.constant 0 : index
    %77 = vector.load %arg3[%c0_53, %c0_54] : memref<8x1xf32, #tpu.memory_space<vmem>>, vector<8x1xf32>
    %78 = vector.broadcast %77 : vector<8x1xf32> to vector<8x256xf32>
    %79 = arith.addf %76, %78 : vector<8x256xf32>
    %cst_55 = arith.constant 0.000000e+00 : f32
    %80 = vector.broadcast %cst_55 : f32 to vector<8x256xf32>
    %81 = arith.maximumf %79, %80 : vector<8x256xf32>
    %c0_56 = arith.constant 0 : index
    %c0_57 = arith.constant 0 : index
    %82 = vector.load %arg6[%c0_56, %c0_57] : memref<8x4xf32, #tpu.memory_space<vmem>>, vector<8x4xf32>
    %cst_58 = arith.constant dense<0.000000e+00> : vector<8x256xf32>
    %83 = tpu.matmul %82, %1, %cst_58 {dimension_numbers = #tpu.dot_dimension_numbers<[1], [0], [0], [1], [0, 0, 1, 1], [], []>} : vector<8x4xf32>, vector<4x256xf32>, vector<8x256xf32> -> vector<8x256xf32>
    %c0_59 = arith.constant 0 : index
    %c0_60 = arith.constant 0 : index
    %84 = vector.load %arg5[%c0_59, %c0_60] : memref<8x1xf32, #tpu.memory_space<vmem>>, vector<8x1xf32>
    %85 = vector.broadcast %84 : vector<8x1xf32> to vector<8x256xf32>
    %86 = arith.addf %83, %85 : vector<8x256xf32>
    %c0_61 = arith.constant 0 : index
    %c0_62 = arith.constant 0 : index
    %c0_63 = arith.constant 0 : index
    %87 = vector.load %arg4[%c0_61, %c0_62, %c0_63] : memref<9x8x8xf32, #tpu.memory_space<vmem>>, vector<1x8x8xf32>
    %88 = vector.shape_cast %87 : vector<1x8x8xf32> to vector<8x8xf32>
    %c17_i32_64 = arith.constant 17 : i32
    %89 = tpu.dynamic_rotate %81 by %c17_i32_64 dim 1 : vector<8x256xf32>, i32 -> vector<8x256xf32>
    %c0_65 = arith.constant 0 : index
    %c0_66 = arith.constant 0 : index
    %c0_67 = arith.constant 0 : index
    %90 = vector.load %arg7[%c0_65, %c0_66, %c0_67] : memref<9x1x256xf32, #tpu.memory_space<vmem>>, vector<1x1x256xf32>
    %91 = vector.shape_cast %90 : vector<1x1x256xf32> to vector<1x256xf32>
    %92 = vector.broadcast %91 : vector<1x256xf32> to vector<8x256xf32>
    %93 = arith.mulf %89, %92 : vector<8x256xf32>
    %cst_68 = arith.constant dense<0.000000e+00> : vector<8x256xf32>
    %94 = tpu.matmul %88, %93, %cst_68 {dimension_numbers = #tpu.dot_dimension_numbers<[1], [0], [0], [1], [0, 0, 1, 1], [], []>} : vector<8x8xf32>, vector<8x256xf32>, vector<8x256xf32> -> vector<8x256xf32>
    %c1_69 = arith.constant 1 : index
    %c0_70 = arith.constant 0 : index
    %c0_71 = arith.constant 0 : index
    %95 = vector.load %arg4[%c1_69, %c0_70, %c0_71] : memref<9x8x8xf32, #tpu.memory_space<vmem>>, vector<1x8x8xf32>
    %96 = vector.shape_cast %95 : vector<1x8x8xf32> to vector<8x8xf32>
    %c16_i32_72 = arith.constant 16 : i32
    %97 = tpu.dynamic_rotate %81 by %c16_i32_72 dim 1 : vector<8x256xf32>, i32 -> vector<8x256xf32>
    %c1_73 = arith.constant 1 : index
    %c0_74 = arith.constant 0 : index
    %c0_75 = arith.constant 0 : index
    %98 = vector.load %arg7[%c1_73, %c0_74, %c0_75] : memref<9x1x256xf32, #tpu.memory_space<vmem>>, vector<1x1x256xf32>
    %99 = vector.shape_cast %98 : vector<1x1x256xf32> to vector<1x256xf32>
    %100 = vector.broadcast %99 : vector<1x256xf32> to vector<8x256xf32>
    %101 = arith.mulf %97, %100 : vector<8x256xf32>
    %cst_76 = arith.constant dense<0.000000e+00> : vector<8x256xf32>
    %102 = tpu.matmul %96, %101, %cst_76 {dimension_numbers = #tpu.dot_dimension_numbers<[1], [0], [0], [1], [0, 0, 1, 1], [], []>} : vector<8x8xf32>, vector<8x256xf32>, vector<8x256xf32> -> vector<8x256xf32>
    %103 = arith.addf %94, %102 : vector<8x256xf32>
    %c2_77 = arith.constant 2 : index
    %c0_78 = arith.constant 0 : index
    %c0_79 = arith.constant 0 : index
    %104 = vector.load %arg4[%c2_77, %c0_78, %c0_79] : memref<9x8x8xf32, #tpu.memory_space<vmem>>, vector<1x8x8xf32>
    %105 = vector.shape_cast %104 : vector<1x8x8xf32> to vector<8x8xf32>
    %c15_i32_80 = arith.constant 15 : i32
    %106 = tpu.dynamic_rotate %81 by %c15_i32_80 dim 1 : vector<8x256xf32>, i32 -> vector<8x256xf32>
    %c2_81 = arith.constant 2 : index
    %c0_82 = arith.constant 0 : index
    %c0_83 = arith.constant 0 : index
    %107 = vector.load %arg7[%c2_81, %c0_82, %c0_83] : memref<9x1x256xf32, #tpu.memory_space<vmem>>, vector<1x1x256xf32>
    %108 = vector.shape_cast %107 : vector<1x1x256xf32> to vector<1x256xf32>
    %109 = vector.broadcast %108 : vector<1x256xf32> to vector<8x256xf32>
    %110 = arith.mulf %106, %109 : vector<8x256xf32>
    %cst_84 = arith.constant dense<0.000000e+00> : vector<8x256xf32>
    %111 = tpu.matmul %105, %110, %cst_84 {dimension_numbers = #tpu.dot_dimension_numbers<[1], [0], [0], [1], [0, 0, 1, 1], [], []>} : vector<8x8xf32>, vector<8x256xf32>, vector<8x256xf32> -> vector<8x256xf32>
    %112 = arith.addf %103, %111 : vector<8x256xf32>
    %c3_85 = arith.constant 3 : index
    %c0_86 = arith.constant 0 : index
    %c0_87 = arith.constant 0 : index
    %113 = vector.load %arg4[%c3_85, %c0_86, %c0_87] : memref<9x8x8xf32, #tpu.memory_space<vmem>>, vector<1x8x8xf32>
    %114 = vector.shape_cast %113 : vector<1x8x8xf32> to vector<8x8xf32>
    %c1_i32_88 = arith.constant 1 : i32
    %115 = tpu.dynamic_rotate %81 by %c1_i32_88 dim 1 : vector<8x256xf32>, i32 -> vector<8x256xf32>
    %c3_89 = arith.constant 3 : index
    %c0_90 = arith.constant 0 : index
    %c0_91 = arith.constant 0 : index
    %116 = vector.load %arg7[%c3_89, %c0_90, %c0_91] : memref<9x1x256xf32, #tpu.memory_space<vmem>>, vector<1x1x256xf32>
    %117 = vector.shape_cast %116 : vector<1x1x256xf32> to vector<1x256xf32>
    %118 = vector.broadcast %117 : vector<1x256xf32> to vector<8x256xf32>
    %119 = arith.mulf %115, %118 : vector<8x256xf32>
    %cst_92 = arith.constant dense<0.000000e+00> : vector<8x256xf32>
    %120 = tpu.matmul %114, %119, %cst_92 {dimension_numbers = #tpu.dot_dimension_numbers<[1], [0], [0], [1], [0, 0, 1, 1], [], []>} : vector<8x8xf32>, vector<8x256xf32>, vector<8x256xf32> -> vector<8x256xf32>
    %121 = arith.addf %112, %120 : vector<8x256xf32>
    %c4_93 = arith.constant 4 : index
    %c0_94 = arith.constant 0 : index
    %c0_95 = arith.constant 0 : index
    %122 = vector.load %arg4[%c4_93, %c0_94, %c0_95] : memref<9x8x8xf32, #tpu.memory_space<vmem>>, vector<1x8x8xf32>
    %123 = vector.shape_cast %122 : vector<1x8x8xf32> to vector<8x8xf32>
    %cst_96 = arith.constant dense<0.000000e+00> : vector<8x256xf32>
    %124 = tpu.matmul %123, %81, %cst_96 {dimension_numbers = #tpu.dot_dimension_numbers<[1], [0], [0], [1], [0, 0, 1, 1], [], []>} : vector<8x8xf32>, vector<8x256xf32>, vector<8x256xf32> -> vector<8x256xf32>
    %125 = arith.addf %121, %124 : vector<8x256xf32>
    %c5_97 = arith.constant 5 : index
    %c0_98 = arith.constant 0 : index
    %c0_99 = arith.constant 0 : index
    %126 = vector.load %arg4[%c5_97, %c0_98, %c0_99] : memref<9x8x8xf32, #tpu.memory_space<vmem>>, vector<1x8x8xf32>
    %127 = vector.shape_cast %126 : vector<1x8x8xf32> to vector<8x8xf32>
    %c255_i32_100 = arith.constant 255 : i32
    %128 = tpu.dynamic_rotate %81 by %c255_i32_100 dim 1 : vector<8x256xf32>, i32 -> vector<8x256xf32>
    %c5_101 = arith.constant 5 : index
    %c0_102 = arith.constant 0 : index
    %c0_103 = arith.constant 0 : index
    %129 = vector.load %arg7[%c5_101, %c0_102, %c0_103] : memref<9x1x256xf32, #tpu.memory_space<vmem>>, vector<1x1x256xf32>
    %130 = vector.shape_cast %129 : vector<1x1x256xf32> to vector<1x256xf32>
    %131 = vector.broadcast %130 : vector<1x256xf32> to vector<8x256xf32>
    %132 = arith.mulf %128, %131 : vector<8x256xf32>
    %cst_104 = arith.constant dense<0.000000e+00> : vector<8x256xf32>
    %133 = tpu.matmul %127, %132, %cst_104 {dimension_numbers = #tpu.dot_dimension_numbers<[1], [0], [0], [1], [0, 0, 1, 1], [], []>} : vector<8x8xf32>, vector<8x256xf32>, vector<8x256xf32> -> vector<8x256xf32>
    %134 = arith.addf %125, %133 : vector<8x256xf32>
    %c6_105 = arith.constant 6 : index
    %c0_106 = arith.constant 0 : index
    %c0_107 = arith.constant 0 : index
    %135 = vector.load %arg4[%c6_105, %c0_106, %c0_107] : memref<9x8x8xf32, #tpu.memory_space<vmem>>, vector<1x8x8xf32>
    %136 = vector.shape_cast %135 : vector<1x8x8xf32> to vector<8x8xf32>
    %c241_i32_108 = arith.constant 241 : i32
    %137 = tpu.dynamic_rotate %81 by %c241_i32_108 dim 1 : vector<8x256xf32>, i32 -> vector<8x256xf32>
    %c6_109 = arith.constant 6 : index
    %c0_110 = arith.constant 0 : index
    %c0_111 = arith.constant 0 : index
    %138 = vector.load %arg7[%c6_109, %c0_110, %c0_111] : memref<9x1x256xf32, #tpu.memory_space<vmem>>, vector<1x1x256xf32>
    %139 = vector.shape_cast %138 : vector<1x1x256xf32> to vector<1x256xf32>
    %140 = vector.broadcast %139 : vector<1x256xf32> to vector<8x256xf32>
    %141 = arith.mulf %137, %140 : vector<8x256xf32>
    %cst_112 = arith.constant dense<0.000000e+00> : vector<8x256xf32>
    %142 = tpu.matmul %136, %141, %cst_112 {dimension_numbers = #tpu.dot_dimension_numbers<[1], [0], [0], [1], [0, 0, 1, 1], [], []>} : vector<8x8xf32>, vector<8x256xf32>, vector<8x256xf32> -> vector<8x256xf32>
    %143 = arith.addf %134, %142 : vector<8x256xf32>
    %c7_113 = arith.constant 7 : index
    %c0_114 = arith.constant 0 : index
    %c0_115 = arith.constant 0 : index
    %144 = vector.load %arg4[%c7_113, %c0_114, %c0_115] : memref<9x8x8xf32, #tpu.memory_space<vmem>>, vector<1x8x8xf32>
    %145 = vector.shape_cast %144 : vector<1x8x8xf32> to vector<8x8xf32>
    %c240_i32_116 = arith.constant 240 : i32
    %146 = tpu.dynamic_rotate %81 by %c240_i32_116 dim 1 : vector<8x256xf32>, i32 -> vector<8x256xf32>
    %c7_117 = arith.constant 7 : index
    %c0_118 = arith.constant 0 : index
    %c0_119 = arith.constant 0 : index
    %147 = vector.load %arg7[%c7_117, %c0_118, %c0_119] : memref<9x1x256xf32, #tpu.memory_space<vmem>>, vector<1x1x256xf32>
    %148 = vector.shape_cast %147 : vector<1x1x256xf32> to vector<1x256xf32>
    %149 = vector.broadcast %148 : vector<1x256xf32> to vector<8x256xf32>
    %150 = arith.mulf %146, %149 : vector<8x256xf32>
    %cst_120 = arith.constant dense<0.000000e+00> : vector<8x256xf32>
    %151 = tpu.matmul %145, %150, %cst_120 {dimension_numbers = #tpu.dot_dimension_numbers<[1], [0], [0], [1], [0, 0, 1, 1], [], []>} : vector<8x8xf32>, vector<8x256xf32>, vector<8x256xf32> -> vector<8x256xf32>
    %152 = arith.addf %143, %151 : vector<8x256xf32>
    %c8_121 = arith.constant 8 : index
    %c0_122 = arith.constant 0 : index
    %c0_123 = arith.constant 0 : index
    %153 = vector.load %arg4[%c8_121, %c0_122, %c0_123] : memref<9x8x8xf32, #tpu.memory_space<vmem>>, vector<1x8x8xf32>
    %154 = vector.shape_cast %153 : vector<1x8x8xf32> to vector<8x8xf32>
    %c239_i32_124 = arith.constant 239 : i32
    %155 = tpu.dynamic_rotate %81 by %c239_i32_124 dim 1 : vector<8x256xf32>, i32 -> vector<8x256xf32>
    %c8_125 = arith.constant 8 : index
    %c0_126 = arith.constant 0 : index
    %c0_127 = arith.constant 0 : index
    %156 = vector.load %arg7[%c8_125, %c0_126, %c0_127] : memref<9x1x256xf32, #tpu.memory_space<vmem>>, vector<1x1x256xf32>
    %157 = vector.shape_cast %156 : vector<1x1x256xf32> to vector<1x256xf32>
    %158 = vector.broadcast %157 : vector<1x256xf32> to vector<8x256xf32>
    %159 = arith.mulf %155, %158 : vector<8x256xf32>
    %cst_128 = arith.constant dense<0.000000e+00> : vector<8x256xf32>
    %160 = tpu.matmul %154, %159, %cst_128 {dimension_numbers = #tpu.dot_dimension_numbers<[1], [0], [0], [1], [0, 0, 1, 1], [], []>} : vector<8x8xf32>, vector<8x256xf32>, vector<8x256xf32> -> vector<8x256xf32>
    %161 = arith.addf %152, %160 : vector<8x256xf32>
    %162 = arith.addf %86, %161 : vector<8x256xf32>
    %cst_129 = arith.constant 0.000000e+00 : f32
    %163 = vector.broadcast %cst_129 : f32 to vector<8x256xf32>
    %164 = arith.maximumf %162, %163 : vector<8x256xf32>
    %c0_130 = arith.constant 0 : index
    %c0_131 = arith.constant 0 : index
    %c0_132 = arith.constant 0 : index
    %165 = vector.load %arg8[%c0_130, %c0_131, %c0_132] : memref<1x8x256xf32, #tpu.memory_space<vmem>>, vector<1x8x256xf32>
    %166 = vector.shape_cast %165 : vector<1x8x256xf32> to vector<8x256xf32>
    %167 = vector.shape_cast %164 : vector<8x256xf32> to vector<1x8x256xf32>
    tpu.vector_store %arg8[%c0_130, %c0_131, %c0_132], %167 {strides = array<i32>} : memref<1x8x256xf32, #tpu.memory_space<vmem>>, vector<1x8x256xf32>,
    return
  }
  func.func @transform_0(%arg0: i32) -> (i32, i32, i32) {
    %c0_i32 = arith.constant 0 : i32
    %c0_i32_0 = arith.constant 0 : i32
    %c0_i32_1 = arith.constant 0 : i32
    return %arg0, %c0_i32, %c0_i32_0 : i32, i32, i32
  }
  func.func @transform_1(%arg0: i32) -> (i32, i32, i32) {
    %c0_i32 = arith.constant 0 : i32
    %c0_i32_0 = arith.constant 0 : i32
    %c0_i32_1 = arith.constant 0 : i32
    %c0_i32_2 = arith.constant 0 : i32
    return %c0_i32, %c0_i32_0, %c0_i32_1 : i32, i32, i32
  }
  func.func @transform_2(%arg0: i32) -> (i32, i32) {
    %c0_i32 = arith.constant 0 : i32
    %c0_i32_0 = arith.constant 0 : i32
    %c0_i32_1 = arith.constant 0 : i32
    return %c0_i32, %c0_i32_0 : i32, i32
  }
  func.func @transform_3(%arg0: i32) -> (i32, i32, i32) {
    %c0_i32 = arith.constant 0 : i32
    %c0_i32_0 = arith.constant 0 : i32
    %c0_i32_1 = arith.constant 0 : i32
    %c0_i32_2 = arith.constant 0 : i32
    return %c0_i32, %c0_i32_0, %c0_i32_1 : i32, i32, i32
  }
  func.func @transform_4(%arg0: i32) -> (i32, i32) {
    %c0_i32 = arith.constant 0 : i32
    %c0_i32_0 = arith.constant 0 : i32
    %c0_i32_1 = arith.constant 0 : i32
    return %c0_i32, %c0_i32_0 : i32, i32
  }
  func.func @transform_5(%arg0: i32) -> (i32, i32) {
    %c0_i32 = arith.constant 0 : i32
    %c0_i32_0 = arith.constant 0 : i32
    %c0_i32_1 = arith.constant 0 : i32
    return %c0_i32, %c0_i32_0 : i32, i32
  }
  func.func @transform_6(%arg0: i32) -> (i32, i32, i32) {
    %c0_i32 = arith.constant 0 : i32
    %c0_i32_0 = arith.constant 0 : i32
    %c0_i32_1 = arith.constant 0 : i32
    %c0_i32_2 = arith.constant 0 : i32
    return %c0_i32, %c0_i32_0, %c0_i32_1 : i32, i32, i32
  }
  func.func @transform_7(%arg0: i32) -> (i32, i32, i32) {
    %c0_i32 = arith.constant 0 : i32
    %c0_i32_0 = arith.constant 0 : i32
    %c0_i32_1 = arith.constant 0 : i32
    return %arg0, %c0_i32, %c0_i32_0 : i32, i32, i32
  }
}

</mosaic_0001>

<bundles_post_ra>
// kernel: tpu_custom_call.1
= control target key start
LH: loop header
LB: loop body
LE: loop exit
PB: predicated region body
PF: predicated region fallthrough
CT: control target
= control target key end

     0   :  { %12 = vsyncpa [#allocation3], 0  ;;  %s2830_s0 = inlined_call_operand.vmem [shape: f32[2,4,256], index: 0, kind: input, shape index: {}]   ;;  %s2831_s1 = inlined_call_operand.vmem [shape: f32[9,8,4], index: 1, kind: input, shape index: {}]   ;;  %s2832_s2 = inlined_call_operand.vmem [shape: f32[8,1], index: 2, kind: input, shape index: {}]   ;;  %s2833_s3 = inlined_call_operand.vmem [shape: f32[9,8,8], index: 3, kind: input, shape index: {}]   ;;  %s2834_s4 = inlined_call_operand.vmem [shape: f32[8,1], index: 4, kind: input, shape index: {}]   ;;  %s2835_s5 = inlined_call_operand.vmem [shape: f32[8,4], index: 5, kind: input, shape index: {}]   ;;  %s2836_s6 = inlined_call_operand.vmem [shape: f32[9,1,256], index: 6, kind: input, shape index: {}]   ;;  %s2837_s7 = inlined_call_operand.hbm [shape: f32[2,8,256], index: 7, kind: output, shape index: {}]  }
   0x1   :  { %14 = vsyncpa [#allocation3 + $0x1], 0  ;;  %s2382_s24 = smov 0   ;;  %s2384_s25 = smov 0  }
   0x2   :  { %s2386_s26 = smov 0   ;;  %s2388_s27 = smov 0  }
   0x3 LB: > { %s2403_s28 = sadd.s32 4294967295, %s2329_s27   ;;  %s2142_s29 = sadd.s32 4294967294, %s2329_s27   ;;  %s2329_s27 = sphi %s2388_s27, %s2843_s27   ;;  %s2325_s26 = sphi %s2386_s26, %s2842_s26   ;;  %s2321_s25 = sphi %s2384_s25, %s2841_s25   ;;  %s2317_s24 = sphi %s2382_s24, %s2840_s24  }
   0x4   : > { %s2407_s30 = sadd.s32 1, %s2329_s27   ;;  %s179_s8 = sadd.s32 1, %s2325_s26 }
   0x5   : > { %s176_s9 = ssub.s32 %s2329_s27, %s2407_s30  ;;  %p189_p0 = scmp.ne.s32.totalorder %s2325_s26, %s2321_s25 }
   0x6   : > { %p177_p1 = scmp.eq.s32.totalorder %s176_s9, 0  ;;  %p190_p2 = scmp.eq.s32.totalorder %s2403_s28, 1 }
   0x7   : > { %p195_p3 = scmp.ne.s32.totalorder %s2321_s25, %s2317_s24  ;;  %p196_p4 = scmp.eq.s32.totalorder %s2142_s29, 1 }
   0x8   : > { %s2418_s10 = scalar_select %p177_p1, %s2325_s26, %s179_s8  }
   0x9   : > { %p2420_p5 = por %p190_p2, %p189_p0  ;;  %p2424_p6 = por %p196_p4, %p195_p3 }
   0xa   : > { %p2145_p7 = scmp.ge.s32.totalorder %s2329_s27, 1  ;;  %p240_p8 = scmp.lt.s32.totalorder %s2329_s27, 3 }
   0xc   : > { %p241_p9 = pnand %p2145_p7, %p240_p8 }
   0xd   : > { %p272_p10 = scmp.lt.s32.totalorder (!%p241_p9), %s2403_s28, 1  ;;  %s2332_s18 = smov (!%p241_p9), 17  }
   0xe   : > { %244 = sbr.rel (%p241_p9) target bundleno = 737 (0x2e1), region = 48  ;;  %s2333_s19 = smov (!%p241_p9), 16  }
   0xf   : > { %s2334_s20 = smov (!%p241_p9), 15   ;;  %s2335_s21 = smov (!%p241_p9), 1  }
  0x10   : > { %s2336_s22 = smov (!%p241_p9), 127   ;;  %s2337_s23 = smov (!%p241_p9), 113  }
  0x11   : > { %s2339_s29 = smov (!%p241_p9), 112   ;;  %s2340_s8 = smov (!%p241_p9), 111  }
  0x13   : > { %s273_s13 = scalar_select %p272_p10, %s2403_s28, 1  ;;  %v2331_v1 = vmov 0.0   ;;  %v2338_v3 = vmov 0   ;;  %v1209_v4 = vld [vmem:[%s2832_s2] sm:$0xff]  ;;  %v286_v5 = vlaneseq  ;;  %vm333_vm1 = vcmask 1043456   ;;  %v2149_v40 = vld [vmem:[%s2831_s1 + $0x8] sm:$0xff] }
  0x14   : > { %404 = vmatprep.mubr.f32.mxu0 %v2331_v1  ;;  %484 = vmatprep.mubr.f32.mxu1 %v2331_v1  ;;  %v291_v10 = vld [vmem:[%s2836_s6] sm:$0x3]  ;;  %v2150_v15 = vld [vmem:[%s2836_s6 + $0x2] sm:$0x3]  ;;  %v2158_v20 = vld [vmem:[%s2836_s6 + $0x4] sm:$0x3] }
  0x15   : > { %s2216_s14 = sshll.u32 %s273_s13, 3  ;;  %2267 = vset.pattern.permute.xlu0 %v2338_v3  ;;  %v294_v6 = vshrl.u32 %v286_v5, 7  ;;  %v2478_v7 = vand.u32 127, %v286_v5  ;;  %v2163_v25 = vld [vmem:[%s2836_s6 + $0x6] sm:$0x3]  ;;  %vm329_vm5 = vcmask 31744  }
  0x16   : > { %s276_s17 = scalar_lea.vmem %s2830_s0, %s2216_s14  ;;  %v278_v26 = vld [vmem:[%s2831_s1] sm:$0xff]  ;;  %v2172_v39 = vld [vmem:[%s2836_s6 + $0xa] sm:$0x3]  ;;  %v2177_v51 = vld [vmem:[%s2836_s6 + $0xc] sm:$0x3]  ;;  %vm1319_vm10 = vcmask 64512  }
  0x17   : > { %v2435_v0 = vld [vmem:[%s276_s17] sm:$0xff]  ;;  %v2480_v8 = vsub.s32 0, %v294_v6  ;;  %v2482_v9 = vsub.s32 1, %v294_v6  ;;  %vm288_vm0 = vcmp.lt.s32.totalorder %v2478_v7, 17  ;;  %vm497_vm2 = vcmp.lt.s32.totalorder %v2478_v7, 15  ;;  %v2157_v52 = vld [vmem:[%s2831_s1 + $0x10] sm:$0xff] }
  0x18   : > { %282 = vrot.lane.b32.xlu1 %v2435_v0, %s2332_s18  ;;  %307 = vrot.lane.b32.xlu0 %v2435_v0, %s2333_s19  ;;  %v2444_v2 = vcombine.high %v2435_v0, %v2435_v0  ;;  %vm311_vm3 = vcmp.lt.s32.totalorder %v2478_v7, 16  ;;  %vm603_vm4 = vcmp.lt.s32.totalorder %v2478_v7, 1  ;;  %vm791_vm6 = vcmp.lt.s32.totalorder %v2478_v7, 127  ;;  %v2162_v53 = vld [vmem:[%s2831_s1 + $0x18] sm:$0xff]  ;;  %v2182_v62 = vld [vmem:[%s2836_s6 + $0xe] sm:$0x3] }
  0x19   : > { %v2489_v13 = vrot.slane %v291_v10, %v2480_v8  ;;  %v2492_v14 = vrot.slane %v291_v10, %v2482_v9  ;;  %v2509_v23 = vrot.slane %v2150_v15, %v2480_v8  ;;  %v2512_v24 = vrot.slane %v2150_v15, %v2482_v9  ;;  %v2167_v63 = vld [vmem:[%s2831_s1 + $0x20] sm:$0xff]  ;;  %v2171_v3 = vld [vmem:[%s2831_s1 + $0x28] sm:$0xff] }
  0x1a   : > { %v2522_v27 = vrot.slane %v2158_v20, %v2480_v8  ;;  %v2525_v28 = vrot.slane %v2158_v20, %v2482_v9  ;;  %v2536_v34 = vrot.slane %v2163_v25, %v2480_v8  ;;  %v2543_v38 = vrot.slane %v2163_v25, %v2482_v9 }
  0x1b   : > { %v2562_v47 = vrot.slane %v2172_v39, %v2480_v8  ;;  %v2570_v50 = vrot.slane %v2172_v39, %v2482_v9  ;;  %v2592_v58 = vrot.slane %v2177_v51, %v2480_v8  ;;  %vm897_vm7 = vcmp.lt.s32.totalorder %v2478_v7, 113  ;;  %v1219_v39 = vld [vmem:[%s2835_s5] sm:$0xff] }
  0x1c   : > { %493 = vrot.lane.b32.xlu0 %v2435_v0, %s2334_s20  ;;  %284 = vrot.lane.b32.xlu1 %v2444_v2, %s2332_s18  ;;  %v2600_v61 = vrot.slane %v2177_v51, %v2482_v9  ;;  %vm1003_vm8 = vcmp.lt.s32.totalorder %v2478_v7, 112  ;;  %vm1109_vm9 = vcmp.lt.s32.totalorder %v2478_v7, 111 }
  0x20   : > { %495 = vrot.lane.b32.xlu1 %v2444_v2, %s2334_s20  ;;  %309 = vrot.lane.b32.xlu0 %v2444_v2, %s2333_s19 }
  0x24   : > { %601 = vrot.lane.b32.xlu1 %v2444_v2, %s2335_s21  ;;  %599 = vrot.lane.b32.xlu0 %v2435_v0, %s2335_s21 }
  0x28   : > { %789 = vrot.lane.b32.xlu1 %v2444_v2, %s2336_s22  ;;  %787 = vrot.lane.b32.xlu0 %v2435_v0, %s2336_s22 }
  0x2c   : > { %895 = vrot.lane.b32.xlu1 %v2444_v2, %s2337_s23  ;;  %893 = vrot.lane.b32.xlu0 %v2435_v0, %s2337_s23 }
  0x30   : > { %1001 = vrot.lane.b32.xlu1 %v2444_v2, %s2339_s29  ;;  %999 = vrot.lane.b32.xlu0 %v2435_v0, %s2339_s29 }
  0x34   : > { %1107 = vrot.lane.b32.xlu1 %v2444_v2, %s2340_s8  ;;  %1105 = vrot.lane.b32.xlu0 %v2435_v0, %s2340_s8 }
  0x38   : > { %1212 = vperm.xlu0 %2267, %v1209_v4  }
  0x8a   : > { %v283_v11 = vpop.permute.xlu1 %282  ;;  %v308_v12 = vpop.permute.xlu0 %307 }
  0x8e   : > { %v494_v16 = vpop.permute.xlu0 %493  ;;  %v285_v17 = vpop.permute.xlu1 %284 }
  0x8f   : > { %v289_v18 = vsel %vm288_vm0, %v283_v11, %v285_v17  ;;  %v290_v19 = vsel %vm288_vm0, %v285_v17, %v283_v11  ;;  %v2622_v11 = vrot.slane %v2182_v62, %v2480_v8  ;;  %v2176_v17 = vld [vmem:[%s2831_s1 + $0x30] sm:$0xff] }
  0x90   : > { %v303_v21 = vmul.f32 %v2489_v13, %v290_v19  ;;  %v304_v22 = vmul.f32 %v2492_v14, %v289_v18  ;;  %v2187_v18 = vld [vmem:[%s2836_s6 + $0x10] sm:$0x3] }
  0x92   : > { %2154 = vmatprep.subr.msk.mxu1 %vm333_vm1, %v304_v22  ;;  %v496_v29 = vpop.permute.xlu1 %495  ;;  %v310_v30 = vpop.permute.xlu0 %309 }
  0x93   : > { %v498_v31 = vsel %vm497_vm2, %v494_v16, %v496_v29  ;;  %v312_v32 = vsel %vm311_vm3, %v308_v12, %v310_v30  ;;  %v313_v33 = vsel %vm311_vm3, %v310_v30, %v308_v12  ;;  %2155 = vmatpush1.msk.msra.mxu1 %vm333_vm1, %v303_v21  ;;  %v499_v35 = vsel %vm497_vm2, %v496_v29, %v494_v16 }
  0x94   : > { %v327_v36 = vmul.f32 %v2509_v23, %v313_v33  ;;  %v328_v37 = vmul.f32 %v2512_v24, %v312_v32  ;;  %2156 = vmatmul.mubr.msk.f32.vlgmr.msra.gmra.mxu1 %vm329_vm5, %v278_v26  ;;  %v514_v41 = vmul.f32 %v2525_v28, %v498_v31  ;;  %v513_v44 = vmul.f32 %v2522_v27, %v499_v35  ;;  %v2181_v31 = vld [vmem:[%s2831_s1 + $0x38] sm:$0xff] }
  0x95   : > { %694 = vmatprep.mubr.f32.mxu1 %v2331_v1  ;;  %v2630_v16 = vrot.slane %v2182_v62, %v2482_v9  ;;  %v2651_v29 = vrot.slane %v2187_v18, %v2480_v8  ;;  %v2654_v30 = vrot.slane %v2187_v18, %v2482_v9 }
  0x96   : > { %v602_v42 = vpop.permute.xlu1 %601  ;;  %2151 = vmatprep.subr.msk.mxu0 %vm333_vm1, %v328_v37  ;;  %v600_v43 = vpop.permute.xlu0 %599  ;;  %v2186_v37 = vld [vmem:[%s2831_s1 + $0x40] sm:$0xff] }
  0x97   : > { %v604_v45 = vsel %vm603_vm4, %v600_v43, %v602_v42  ;;  %v605_v46 = vsel %vm603_vm4, %v602_v42, %v600_v43  ;;  %2152 = vmatpush1.msk.msra.mxu0 %vm333_vm1, %v327_v36 }
  0x98   : > { %v619_v48 = vmul.f32 %v2536_v34, %v605_v46  ;;  %v620_v49 = vmul.f32 %v2543_v38, %v604_v45  ;;  %2153 = vmatmul.mubr.msk.f32.vlgmr.msra.gmra.mxu0 %vm329_vm5, %v2149_v40  ;;  %2159 = vmatprep.subr.msk.mxu0 %vm333_vm1, %v514_v41 }
  0x99   : > { %2160 = vmatpush1.msk.msra.mxu0 %vm333_vm1, %v513_v44  ;;  %588 = vmatprep.mubr.f32.mxu0 %v2331_v1 }
  0x9a   : > { %v790_v54 = vpop.permute.xlu1 %789  ;;  %2164 = vmatprep.subr.msk.mxu1 %vm333_vm1, %v620_v49  ;;  %v788_v55 = vpop.permute.xlu0 %787  ;;  %2168 = vmatprep.subr.msk.mxu0 %vm333_vm1, %v2444_v2 }
  0x9b   : > { %v792_v56 = vsel %vm791_vm6, %v788_v55, %v790_v54  ;;  %v793_v57 = vsel %vm791_vm6, %v790_v54, %v788_v55  ;;  %2165 = vmatpush1.msk.msra.mxu1 %vm333_vm1, %v619_v48 }
  0x9c   : > { %v807_v59 = vmul.f32 %v2562_v47, %v792_v56  ;;  %v808_v60 = vmul.f32 %v2570_v50, %v793_v57  ;;  %2161 = vmatmul.mubr.msk.f32.vlgmr.msra.gmra.mxu0 %vm329_vm5, %v2157_v52  ;;  %2166 = vmatmul.mubr.msk.f32.vlgmr.msra.gmra.mxu1 %vm329_vm5, %v2162_v53 }
  0x9d   : > { %2169 = vmatpush1.msk.msra.mxu0 %vm333_vm1, %v2435_v0  ;;  %776 = vmatprep.mubr.f32.mxu0 %v2331_v1 }
  0x9e   : > { %v896_v4 = vpop.permute.xlu1 %895  ;;  %2173 = vmatprep.subr.msk.mxu1 %vm333_vm1, %v808_v60  ;;  %v894_v5 = vpop.permute.xlu0 %893  ;;  %882 = vmatprep.mubr.f32.mxu1 %v2331_v1 }
  0x9f   : > { %v898_v6 = vsel %vm897_vm7, %v894_v5, %v896_v4  ;;  %v899_v10 = vsel %vm897_vm7, %v896_v4, %v894_v5  ;;  %2174 = vmatpush1.msk.msra.mxu1 %vm333_vm1, %v807_v59 }
  0xa0   : > { %v913_v12 = vmul.f32 %v2592_v58, %v898_v6  ;;  %v914_v15 = vmul.f32 %v2600_v61, %v899_v10  ;;  %2170 = vmatmul.mubr.msk.f32.vlgmr.msra.gmra.mxu0 %vm329_vm5, %v2167_v63  ;;  %2175 = vmatmul.mubr.msk.f32.vlgmr.msra.gmra.mxu1 %vm329_vm5, %v2171_v3 }
  0xa1   : > { %988 = vmatprep.mubr.f32.mxu0 %v2331_v1  ;;  %1094 = vmatprep.mubr.f32.mxu1 %v2331_v1 }
  0xa2   : > { %v1002_v19 = vpop.permute.xlu1 %1001  ;;  %2178 = vmatprep.subr.msk.mxu0 %vm333_vm1, %v914_v15  ;;  %v1000_v20 = vpop.permute.xlu0 %999 }
  0xa3   : > { %v1004_v21 = vsel %vm1003_vm8, %v1000_v20, %v1002_v19  ;;  %v1005_v22 = vsel %vm1003_vm8, %v1002_v19, %v1000_v20  ;;  %2179 = vmatpush1.msk.msra.mxu0 %vm333_vm1, %v913_v12 }
  0xa4   : > { %v1019_v25 = vmul.f32 %v2622_v11, %v1004_v21  ;;  %v1020_v26 = vmul.f32 %v2630_v16, %v1005_v22  ;;  %2180 = vmatmul.mubr.msk.f32.vlgmr.msra.gmra.mxu0 %vm329_vm5, %v2176_v17 }
  0xa5   : > { %1200 = vmatprep.mubr.f32.mxu0 %v2331_v1 }
  0xa6   : > { %v1108_v32 = vpop.permute.xlu1 %1107  ;;  %2183 = vmatprep.subr.msk.mxu1 %vm333_vm1, %v1020_v26  ;;  %v1106_v33 = vpop.permute.xlu0 %1105 }
  0xa7   : > { %v1110_v35 = vsel %vm1109_vm9, %v1106_v33, %v1108_v32  ;;  %v1111_v8 = vsel %vm1109_vm9, %v1108_v32, %v1106_v33  ;;  %2184 = vmatpush1.msk.msra.mxu1 %vm333_vm1, %v1019_v25  ;;  %v1220_v33 = vld [vmem:[%s2834_s4] sm:$0xff] }
  0xa8   : > { %v1125_v9 = vmul.f32 %v2651_v29, %v1110_v35  ;;  %v1126_v36 = vmul.f32 %v2654_v30, %v1111_v8  ;;  %2185 = vmatmul.mubr.msk.f32.vlgmr.msra.gmra.mxu1 %vm329_vm5, %v2181_v31  ;;  %2191 = vmatprep.subr.msk.mxu1 %vm333_vm1, %v2444_v2 }
  0xa9   : > { %2192 = vmatpush1.msk.msra.mxu1 %vm333_vm1, %v2435_v0  ;;  %1293 = vmatprep.mubr.f32.mxu1 %v2331_v1 }
  0xaa   : > { %2188 = vmatprep.subr.msk.mxu0 %vm333_vm1, %v1126_v36 }
  0xab   : > { %2189 = vmatpush1.msk.msra.mxu0 %vm333_vm1, %v1125_v9 }
  0xac   : > { %2190 = vmatmul.mubr.msk.f32.vlgmr.msra.gmra.mxu0 %vm329_vm5, %v2186_v37  ;;  %2193 = vmatmul.mubr.msk.f32.vlgmr.msra.gmra.mxu1 %vm329_vm5, %v1219_v39 }
  0xad   : > { %1387 = vmatprep.mubr.f32.mxu0 %v2331_v1  ;;  %1461 = vmatprep.mubr.f32.mxu1 %v2331_v1 }
  0xb3   : > { %v1213_v18 = vpop.permute.xlu0 %1212 }
 0x154   : > { %v486_v2 = vpop.f32.mrf.mxu1 }
 0x156   : > { %v488_v40 = vpop.f32.mrf.mxu1 }
 0x158   : > { %v406_v0 = vpop.f32.mrf.mxu0 }
 0x159   : > { %v487_v41 = vadd.f32 %v486_v2, %v406_v0 }
 0x15a   : > { %v408_v42 = vpop.f32.mrf.mxu0 }
 0x15b   : > { %v489_v43 = vadd.f32 %v488_v40, %v408_v42  ;;  %v2194_v40 = vld [vmem:[%s2833_s3 + $0x8] sm:$0xff] }
 0x15c   : > { %v590_v44 = vpop.f32.mrf.mxu0  ;;  %v696_v45 = vpop.f32.mrf.mxu1 }
 0x15d   : > { %v595_v46 = vadd.f32 %v590_v44, %v487_v41 }
 0x15e   : > { %v592_v48 = vpop.f32.mrf.mxu0  ;;  %v698_v49 = vpop.f32.mrf.mxu1 }
 0x15f   : > { %v596_v51 = vadd.f32 %v592_v48, %v489_v43  ;;  %v701_v52 = vadd.f32 %v696_v45, %v595_v46 }
 0x160   : > { %v778_v53 = vpop.f32.mrf.mxu0  ;;  %v884_v54 = vpop.f32.mrf.mxu1 }
 0x161   : > { %v702_v55 = vadd.f32 %v698_v49, %v596_v51  ;;  %v783_v56 = vadd.f32 %v778_v53, %v701_v52  ;;  %v2197_v52 = vld [vmem:[%s2833_s3 + $0x10] sm:$0xff] }
 0x162   : > { %v780_v57 = vpop.f32.mrf.mxu0  ;;  %v886_v62 = vpop.f32.mrf.mxu1 }
 0x163   : > { %v784_v59 = vadd.f32 %v780_v57, %v702_v55  ;;  %v889_v60 = vadd.f32 %v884_v54, %v783_v56  ;;  %v2199_v56 = vld [vmem:[%s2833_s3 + $0x18] sm:$0xff]  ;;  %v2201_v57 = vld [vmem:[%s2833_s3 + $0x20] sm:$0xff] }
 0x164   : > { %v990_v63 = vpop.f32.mrf.mxu0 }
 0x165   : > { %v890_v3 = vadd.f32 %v886_v62, %v784_v59  ;;  %v995_v4 = vadd.f32 %v990_v63, %v889_v60 }
 0x166   : > { %v992_v5 = vpop.f32.mrf.mxu0 }
 0x167   : > { %v996_v12 = vadd.f32 %v992_v5, %v890_v3  ;;  %v2203_v3 = vld [vmem:[%s2833_s3 + $0x28] sm:$0xff] }
 0x168   : > { %v1096_v6 = vpop.f32.mrf.mxu1 }
 0x169   : > { %v1101_v15 = vadd.f32 %v1096_v6, %v995_v4 }
 0x16a   : > { %v1098_v10 = vpop.f32.mrf.mxu1 }
 0x16b   : > { %v1102_v19 = vadd.f32 %v1098_v10, %v996_v12  ;;  %v2205_v12 = vld [vmem:[%s2833_s3 + $0x30] sm:$0xff] }
 0x16c   : > { %v1202_v17 = vpop.f32.mrf.mxu0 }
 0x16d   : > { %v1207_v20 = vadd.f32 %v1202_v17, %v1101_v15 }
 0x16e   : > { %v1204_v21 = vpop.f32.mrf.mxu0 }
 0x16f   : > { %v1208_v22 = vadd.f32 %v1204_v21, %v1102_v19  ;;  %v1215_v25 = vadd.f32 %v1213_v18, %v1207_v20  ;;  %v2207_v19 = vld [vmem:[%s2833_s3 + $0x38] sm:$0xff] }
 0x171   : > { %v1216_v26 = vadd.f32 %v1213_v18, %v1208_v22  ;;  %v1217_v31 = vmax.f32 %v1215_v25, 0.0 }
 0x173   : > { %1301 = vrot.lane.b32.xlu0 %v1217_v31, %s2332_s18  ;;  %1311 = vrot.lane.b32.xlu1 %v1217_v31, %s2333_s19  ;;  %v1218_v32 = vmax.f32 %v1216_v26, 0.0  ;;  %v1295_v26 = vpop.f32.mrf.mxu1 }
 0x177   : > { %1470 = vrot.lane.b32.xlu0 %v1217_v31, %s2334_s20  ;;  %1313 = vrot.lane.b32.xlu1 %v1218_v32, %s2333_s19 }
 0x17b   : > { %1556 = vrot.lane.b32.xlu0 %v1217_v31, %s2335_s21  ;;  %1303 = vrot.lane.b32.xlu1 %v1218_v32, %s2332_s18  ;;  %s2341_s18 = smov [#allocation2]  }
 0x17f   : > { %1720 = vrot.lane.b32.xlu0 %v1217_v31, %s2336_s22  ;;  %1472 = vrot.lane.b32.xlu1 %v1218_v32, %s2334_s20 }
 0x183   : > { %1806 = vrot.lane.b32.xlu0 %v1217_v31, %s2337_s23  ;;  %1558 = vrot.lane.b32.xlu1 %v1218_v32, %s2335_s21 }
 0x187   : > { %1892 = vrot.lane.b32.xlu0 %v1217_v31, %s2339_s29  ;;  %1722 = vrot.lane.b32.xlu1 %v1218_v32, %s2336_s22 }
 0x18b   : > { %1978 = vrot.lane.b32.xlu0 %v1217_v31, %s2340_s8  ;;  %1808 = vrot.lane.b32.xlu1 %v1218_v32, %s2337_s23  ;;  %s269_s23 = sand.u32 1, %s2321_s25  }
 0x18c   : > { %s2069_s19 = scalar_lea.sflag [#allocation3], %s269_s23 }
 0x18f   : > { %1223 = vperm.xlu0 %2267, %v1220_v33   ;;  %1894 = vrot.lane.b32.xlu1 %v1218_v32, %s2339_s29  ;;  %s2146_s29 = sshll.u32 %s269_s23, 4 }
 0x190   : > { %s271_s15 = scalar_lea.vmem [#allocation2], %s2146_s29 }
 0x191   : > { %s2083_s16 = sshll.u32 %s271_s15, 4  ;;  %s2084_s16 = int_to_ptr.vmem [resolvable:$true] %s2083_s16 }
 0x192   : > { %s2269_s14 = scalar_lea.vmem %s2084_s16, 256 }
 0x193   : > { %1980 = vrot.lane.b32.xlu1 %v1218_v32, %s2340_s8  ;;  %s2217_s8 = sshll.u32 %s2403_s28, 8  ;;  %p2270_p11 = scmp.ne.s32.totalorder %s2084_s16, %s2269_s14 }
 0x194   : > { %s2081_s13 = scalar_lea.hbm %s2837_s7, %s2217_s8  ;;  %s2273_s28 = sshll.u32 %s2341_s18, 4  ;;  %s2274_s28 = int_to_ptr.vmem [resolvable:$false] %s2273_s28 }
 0x195   : > { %p2271_p12 = pnand %p2270_p11, %p2420_p5  ;;  %s2275_s20 = scalar_lea.vmem %s2274_s28, 512 }
 0x196   : > { %p2276_p0 = scmp.lt.s32.totalorder %s2084_s16, %s2274_s28  ;;  %p2277_p1 = scmp.lt.s32.totalorder %s2275_s20, %s2269_s14 }
 0x197   : > { %p2272_p13 = pneg %p2271_p12 }
 0x198   : > { %p2278_p2 = por %p2277_p1, %p2276_p0 }
 0x19a   : > { %p2279_p3 = pnand %p2278_p2, %p2272_p13 }
 0x1e5   : > { %v1302_v35 = vpop.permute.xlu0 %1301  ;;  %v1312_v8 = vpop.permute.xlu1 %1311 }
 0x1e9   : > { %v1471_v9 = vpop.permute.xlu0 %1470  ;;  %v1314_v36 = vpop.permute.xlu1 %1313 }
 0x1ea   : > { %v1315_v37 = vsel %vm311_vm3, %v1312_v8, %v1314_v36  ;;  %v1316_v39 = vsel %vm311_vm3, %v1314_v36, %v1312_v8 }
 0x1eb   : > { %v1317_v2 = vmul.f32 %v1316_v39, %v2509_v23  ;;  %v1318_v0 = vmul.f32 %v1315_v37, %v2512_v24  ;;  %v1300_v24 = vld [vmem:[%s2833_s3] sm:$0xff] }
 0x1ed   : > { %v1557_v41 = vpop.permute.xlu0 %1556  ;;  %1353 = vmatprep.subr.mxu0 %v1318_v0  ;;  %v1304_v42 = vpop.permute.xlu1 %1303 }
 0x1ee   : > { %v1305_v43 = vsel %vm288_vm0, %v1302_v35, %v1304_v42  ;;  %v1306_v44 = vsel %vm288_vm0, %v1304_v42, %v1302_v35  ;;  %1354 = vmatpush1.msra.mxu0 %v1317_v2 }
 0x1ef   : > { %v1307_v45 = vmul.f32 %v1306_v44, %v2489_v13  ;;  %v1308_v23 = vmul.f32 %v1305_v43, %v2492_v14  ;;  %2195 = vmatmul.mubr.msk.f32.vlgmr.msra.gmra.mxu0 %vm1319_vm10, %v2194_v40 }
 0x1f0   : > { %1545 = vmatprep.mubr.f32.mxu0 %v2331_v1 }
 0x1f1   : > { %1427 = vmatprep.subr.mxu1 %v1308_v23  ;;  %v1473_v46 = vpop.permute.xlu1 %1472  ;;  %v1721_v13 = vpop.permute.xlu0 %1720 }
 0x1f2   : > { %v1474_v48 = vsel %vm497_vm2, %v1471_v9, %v1473_v46  ;;  %v1475_v49 = vsel %vm497_vm2, %v1473_v46, %v1471_v9  ;;  %1428 = vmatpush1.msra.mxu1 %v1307_v45 }
 0x1f3   : > { %v1476_v14 = vmul.f32 %v1475_v49, %v2522_v27  ;;  %v1477_v51 = vmul.f32 %v1474_v48, %v2525_v28  ;;  %2196 = vmatmul.mubr.msk.f32.vlgmr.msra.gmra.mxu1 %vm1319_vm10, %v1300_v24 }
 0x1f4   : > { %1631 = vmatprep.mubr.f32.mxu1 %v2331_v1 }
 0x1f5   : > { %1511 = vmatprep.subr.mxu0 %v1477_v51  ;;  %v1559_v53 = vpop.permute.xlu1 %1558  ;;  %v1807_v59 = vpop.permute.xlu0 %1806 }
 0x1f6   : > { %v1560_v54 = vsel %vm603_vm4, %v1557_v41, %v1559_v53  ;;  %v1561_v55 = vsel %vm603_vm4, %v1559_v53, %v1557_v41  ;;  %1512 = vmatpush1.msra.mxu0 %v1476_v14 }
 0x1f7   : > { %v1562_v27 = vmul.f32 %v1561_v55, %v2536_v34  ;;  %v1563_v28 = vmul.f32 %v1560_v54, %v2543_v38  ;;  %1675 = vmatprep.subr.mxu0 %v1218_v32  ;;  %2198 = vmatmul.mubr.msk.f32.vlgmr.msra.gmra.mxu0 %vm1319_vm10, %v2197_v52  ;;  %v1297_v32 = vpop.f32.mrf.mxu1 }
 0x1f8   : > { %1676 = vmatpush1.msra.mxu0 %v1217_v31  ;;  %1709 = vmatprep.mubr.f32.mxu0 %v2331_v1 }
 0x1f9   : > { %1597 = vmatprep.subr.mxu1 %v1563_v28  ;;  %v1723_v60 = vpop.permute.xlu1 %1722 }
 0x1fa   : > { %v1724_v34 = vsel %vm791_vm6, %v1721_v13, %v1723_v60  ;;  %v1725_v38 = vsel %vm791_vm6, %v1723_v60, %v1721_v13  ;;  %1598 = vmatpush1.msra.mxu1 %v1562_v27 }
 0x1fb   : > { %v1726_v62 = vmul.f32 %v1724_v34, %v2562_v47  ;;  %v1727_v63 = vmul.f32 %v1725_v38, %v2570_v50  ;;  %2200 = vmatmul.mubr.msk.f32.vlgmr.msra.gmra.mxu1 %vm1319_vm10, %v2199_v56  ;;  %2202 = vmatmul.mubr.msk.f32.vlgmr.msra.gmra.mxu0 %vm1319_vm10, %v2201_v57  ;;  %v1893_v50 = vpop.permute.xlu0 %1892 }
 0x1fc   : > { %1795 = vmatprep.mubr.f32.mxu1 %v2331_v1  ;;  %1881 = vmatprep.mubr.f32.mxu0 %v2331_v1 }
 0x1fd   : > { %1761 = vmatprep.subr.mxu1 %v1727_v63  ;;  %v1809_v4 = vpop.permute.xlu1 %1808 }
 0x1fe   : > { %v1810_v5 = vsel %vm897_vm7, %v1807_v59, %v1809_v4  ;;  %v1811_v47 = vsel %vm897_vm7, %v1809_v4, %v1807_v59  ;;  %1762 = vmatpush1.msra.mxu1 %v1726_v62 }
 0x1ff   : > { %v1812_v6 = vmul.f32 %v1810_v5, %v2592_v58  ;;  %v1813_v10 = vmul.f32 %v1811_v47, %v2600_v61  ;;  %2204 = vmatmul.mubr.msk.f32.vlgmr.msra.gmra.mxu1 %vm1319_vm10, %v2203_v3  ;;  %v1979_v20 = vpop.permute.xlu0 %1978 }
 0x200   : > { %1967 = vmatprep.mubr.f32.mxu1 %v2331_v1 }
 0x201   : > { %1847 = vmatprep.subr.mxu0 %v1813_v10  ;;  %v1895_v15 = vpop.permute.xlu1 %1894 }
 0x202   : > { %v1896_v17 = vsel %vm1003_vm8, %v1893_v50, %v1895_v15  ;;  %v1897_v18 = vsel %vm1003_vm8, %v1895_v15, %v1893_v50  ;;  %1848 = vmatpush1.msra.mxu0 %v1812_v6 }
 0x203   : > { %v1898_v58 = vmul.f32 %v1896_v17, %v2622_v11  ;;  %v1899_v61 = vmul.f32 %v1897_v18, %v2630_v16  ;;  %2206 = vmatmul.mubr.msk.f32.vlgmr.msra.gmra.mxu0 %vm1319_vm10, %v2205_v12 }
 0x204   : > { %2053 = vmatprep.mubr.f32.mxu0 %v2331_v1  ;;  %v2209_v1 = vld [vmem:[%s2833_s3 + $0x40] sm:$0xff] }
 0x205   : > { %1933 = vmatprep.subr.mxu1 %v1899_v61  ;;  %v1981_v21 = vpop.permute.xlu1 %1980 }
 0x206   : > { %v1982_v22 = vsel %vm1109_vm9, %v1979_v20, %v1981_v21  ;;  %v1983_v25 = vsel %vm1109_vm9, %v1981_v21, %v1979_v20  ;;  %1934 = vmatpush1.msra.mxu1 %v1898_v58 }
 0x207   : > { %v1984_v11 = vmul.f32 %v1982_v22, %v2651_v29  ;;  %v1985_v16 = vmul.f32 %v1983_v25, %v2654_v30  ;;  %2208 = vmatmul.mubr.msk.f32.vlgmr.msra.gmra.mxu1 %vm1319_vm10, %v2207_v19 }
 0x209   : > { %2019 = vmatprep.subr.mxu0 %v1985_v16 }
 0x20a   : > { %2020 = vmatpush1.msra.mxu0 %v1984_v11  ;;  %v1224_v51 = vpop.permute.xlu0 %1223 }
 0x20b   : > { %2210 = vmatmul.mubr.msk.f32.vlgmr.msra.gmra.mxu0 %vm1319_vm10, %v2209_v1  ;;  %v1296_v27 = vadd.f32 %v1295_v26, %v1224_v51  ;;  %v1298_v59 = vadd.f32 %v1297_v32, %v1224_v51 }
 0x2af   : > { %v1389_v31 = vpop.f32.mrf.mxu0 }
 0x2b1   : > { %v1391_v7 = vpop.f32.mrf.mxu0 }
 0x2b3   : > { %v1463_v33 = vpop.f32.mrf.mxu1 }
 0x2b4   : > { %v1464_v35 = vadd.f32 %v1463_v33, %v1389_v31 }
 0x2b5   : > { %v1465_v8 = vpop.f32.mrf.mxu1 }
 0x2b6   : > { %v1466_v29 = vadd.f32 %v1465_v8, %v1391_v7 }
 0x2b7   : > { %v1547_v9 = vpop.f32.mrf.mxu0 }
 0x2b8   : > { %v1552_v30 = vadd.f32 %v1547_v9, %v1464_v35 }
 0x2b9   : > { %v1549_v36 = vpop.f32.mrf.mxu0 }
 0x2ba   : > { %v1553_v37 = vadd.f32 %v1549_v36, %v1466_v29 }
 0x2bb   : > { %v1633_v39 = vpop.f32.mrf.mxu1  ;;  %v1711_v2 = vpop.f32.mrf.mxu0 }
 0x2bc   : > { %v1638_v0 = vadd.f32 %v1633_v39, %v1552_v30 }
 0x2bd   : > { %v1635_v40 = vpop.f32.mrf.mxu1  ;;  %v1713_v43 = vpop.f32.mrf.mxu0 }
 0x2be   : > { %v1639_v41 = vadd.f32 %v1635_v40, %v1553_v37  ;;  %v1716_v42 = vadd.f32 %v1711_v2, %v1638_v0 }
 0x2bf   : > { %v1797_v44 = vpop.f32.mrf.mxu1 }
 0x2c0   : > { %v1717_v45 = vadd.f32 %v1713_v43, %v1639_v41  ;;  %v1802_v23 = vadd.f32 %v1797_v44, %v1716_v42 }
 0x2c1   : > { %v1799_v24 = vpop.f32.mrf.mxu1 }
 0x2c2   : > { %v1803_v48 = vadd.f32 %v1799_v24, %v1717_v45 }
 0x2c3   : > { %v1883_v46 = vpop.f32.mrf.mxu0 }
 0x2c4   : > { %v1888_v49 = vadd.f32 %v1883_v46, %v1802_v23 }
 0x2c5   : > { %v1885_v13 = vpop.f32.mrf.mxu0 }
 0x2c6   : > { %v1889_v53 = vadd.f32 %v1885_v13, %v1803_v48 }
 0x2c7   : > { %v1969_v14 = vpop.f32.mrf.mxu1 }
 0x2c8   : > { %v1974_v54 = vadd.f32 %v1969_v14, %v1888_v49 }
 0x2c9   : > { %v1971_v52 = vpop.f32.mrf.mxu1 }
 0x2ca   : > { %v1975_v28 = vadd.f32 %v1971_v52, %v1889_v53 }
 0x2cb   : > { %v2055_v55 = vpop.f32.mrf.mxu0 }
 0x2cc   : > { %v2060_v56 = vadd.f32 %v2055_v55, %v1974_v54 }
 0x2cd   : > { %v2057_v57 = vpop.f32.mrf.mxu0 }
 0x2ce   : > { %v2062_v60 = vadd.f32 %v2060_v56, %v1296_v27  ;;  %v2061_v34 = vadd.f32 %v2057_v57, %v1975_v28 }
 0x2d0   : > { %v2064_v38 = vmax.f32 %v2062_v60, 0.0  ;;  %v2063_v62 = vadd.f32 %v2061_v34, %v1298_v59 }
 0x2d2   : > { %2066 = vst [vmem:[%s271_s15] sm:$0xff] %v2064_v38  ;;  %v2065_v63 = vmax.f32 %v2063_v62, 0.0 }
 0x2d4   : > { %2067 = vst [vmem:[%s271_s15 + $0x8] sm:$0xff] %v2065_v63 }
 0x2d5   : > { %2282 = shalt.err (!%p2279_p3)
}
 0x2d6   : > { %s2283_s21 = scalar_lea.hbm %s2081_s13, 256  ;;  %s2287_s29 = scalar_lea.hbm %s2837_s7, 512 }
 0x2d7   : > { %p2284_p4 = scmp.ne.s32.totalorder %s2081_s13, %s2283_s21  ;;  %p2288_p9 = scmp.lt.s32.totalorder %s2081_s13, %s2837_s7 }
 0x2d8   : > { %p2289_p10 = scmp.lt.s32.totalorder %s2287_s29, %s2283_s21 }
 0x2d9   : > { %p2285_p7 = pnand %p2284_p4, %p2420_p5 }
 0x2da   : > { %p2290_p11 = por %p2289_p10, %p2288_p9 }
 0x2db   : > { %p2286_p8 = pneg %p2285_p7 }
 0x2dd   : > { %p2291_p12 = pnand %p2290_p11, %p2286_p8 }
 0x2df   : > { %2294 = shalt.err (!%p2291_p12)
}
 0x2e0   : > { %2218 = dma.vmem_to_hbm [thread:$0]  (%p2420_p5), %s2084_s16, 256, %s2081_s13, %s2069_s19  }
 0x2e1 PF: > { %p2224_p13 = scmp.ge.s32.totalorder %s2329_s27, 2  ;;  %s2095_s17 = sand.u32 1, %s2317_s24  }
 0x2e2   : > { %s2096_s9 = scalar_lea.sflag [#allocation3], %s2095_s17 }
 0x2e3   : > { %p2221_p0 = pnand %p2224_p13, %p2424_p6 }
 0x2e5   : > { %p2222_p1 = pneg %p2221_p0 }
 0x2e7   : > { %2312 = dma.done.wait (%p2222_p1), %s2096_s9, 256  }
 0x2e8   : > { %2314 = vsyncadd (%p2222_p1), %s2096_s9, 4294967040  ;;  %p17_p2 = scmp.ge.s32.totalorder %s2407_s30, 4   ;;  %s2840_s24 = smov %s2321_s25 }
 0x2e9   : > { %s2841_s25 = smov %s2325_s26  ;;  %s2842_s26 = smov %s2418_s10 }
 0x2ea   : > { %s2843_s27 = smov %s2407_s30  ;;  %19 = sbr.rel (!%p17_p2) target bundleno = 3 (0x3), region = 106 }
 0x2ef   :  { %2101 = vsyncpa [#allocation3], 1 }
 0x2f0   :  { %2103 = vsyncpa [#allocation3 + $0x1], 1 }

</bundles_post_ra>
